<compile_context>
chip_gen: v5e
topology: v5e:2x2
jax: 0.10.0
libtpu: 0.0.40
codegen_flags: <defaults>
</compile_context>

<pallas_src>
import numpy as np
import jax
import jax.numpy as jnp
from jax.experimental import pallas as pl
from jax.experimental.pallas import tpu as pltpu


def _round_up(x, m):
    return (x + m - 1) // m * m


def _vmem_capacity_bytes():
    """Physical VMEM per TensorCore; falls back to the smallest (v7x, 64 MiB) if the
    trace-time query is unavailable."""
    try:
        info = pltpu.get_tpu_info()
        for attr in ("vmem_capacity_bytes", "vmem_bytes", "vmem_size_bytes"):
            v = getattr(info, attr, None)
            if v:
                return int(v)
    except Exception:
        pass
    return 64 << 20


def residual_block_kernel(x_ref, w1ws_ref, t1bs_ref, w2_ref, t2_ref, o_ref):
    out_p = o_ref.shape[-1]
    x = x_ref[...]                                       # bf16 [tb, in_p]

    # One fused MXU pass for both x-LHS matmuls (f32 accumulate):
    #   x @ [W1*s1 | Ws]  +  [t1 | bs]  ->  [h_pre | r]
    hr = jnp.dot(x, w1ws_ref[...], preferred_element_type=jnp.float32) + t1bs_ref[...]
    h = jnp.maximum(hr[:, :out_p], 0.0)                  # branch: Linear+BN -> ReLU
    r = hr[:, out_p:]                                    # shortcut: Linear (or identity)
    # Dropout: identity (eval mode).

    # Second Linear + BN(eval) folded into (w2, t2). Cast back to bf16 for the MXU.
    h = jnp.dot(h.astype(w2_ref.dtype), w2_ref[...],
                preferred_element_type=jnp.float32) + t2_ref[...]

    # Residual add -> ReLU (-> Dropout identity). Single cast at the store.
    o_ref[...] = jnp.maximum(h + r, 0.0).astype(o_ref.dtype)


def fold_params(p, eps=1e-5, compute_dtype=jnp.bfloat16):
    """Fold BN(eval) + Linear bias into weights/shifts (in f32), fuse the two x-LHS
    matmul operands, pad features to multiples of 128, cast weights to bf16."""
    in_f, out_f = p["w1"].shape
    in_p = _round_up(in_f, 128)
    out_p = _round_up(out_f, 128)

    def pad2(w, rows, cols):
        return jnp.pad(w, ((0, rows - w.shape[0]), (0, cols - w.shape[1])))

    def pad1(v, cols):
        return jnp.pad(v, ((0, 0), (0, cols - v.shape[1])))

    # BN eval fold: BN(xW + b) = x (W*s) + (b*s + t), s = gamma/sqrt(var+eps),
    # t = beta - mean*s. Done in f32, then weights cast to bf16.
    s1 = p["gamma1"] / jnp.sqrt(p["rvar1"] + eps)
    sh1 = p["beta1"] - p["rmean1"] * s1 + p["b1"] * s1
    s2 = p["gamma2"] / jnp.sqrt(p["rvar2"] + eps)
    sh2 = p["beta2"] - p["rmean2"] * s2 + p["b2"] * s2

    # Shortcut: Linear(in_f, out_f) when in_f != out_f, else Identity (W = I, b = 0).
    if p.get("ws") is not None:
        ws, bs = p["ws"], p["bs"]
    else:
        ws = jnp.eye(in_f, out_f, dtype=jnp.float32)
        bs = jnp.zeros((1, out_f), jnp.float32)

    # Fuse the two x-LHS matmuls into one [in_p, 2*out_p] operand + one shift vector.
    w1ws = jnp.concatenate([pad2(p["w1"] * s1, in_p, out_p), pad2(ws, in_p, out_p)], axis=1)
    t1bs = jnp.concatenate([pad1(sh1, out_p), pad1(bs, out_p)], axis=1)

    return dict(
        w1ws=w1ws.astype(compute_dtype),
        t1bs=t1bs.astype(jnp.float32),
        w2=pad2(p["w2"] * s2, out_p, out_p).astype(compute_dtype),
        t2=pad1(sh2, out_p).astype(jnp.float32),
        in_features=in_f, out_features=out_f,
        in_padded=in_p, out_padded=out_p,
    )


def residual_block(x, fp, *, batch_tile=None, out_dtype=jnp.bfloat16):
    """x: [B, in_f] float32. fp: folded params from fold_params()."""
    B, in_f = x.shape
    assert in_f == fp["in_features"]
    in_p, out_p = fp["in_padded"], fp["out_padded"]
    out_f = fp["out_features"]
    out_bytes = jnp.dtype(out_dtype).itemsize

    # Generation-aware limits: 128 MiB VMEM chips (v5e/v6e) get bigger tiles and a
    # ~100 MiB scoped limit; v7x (64 MiB/TC) stays clamped at 56 MiB / tb<=512.
    vmem_cap = _vmem_capacity_bytes()
    big_vmem = vmem_cap >= (100 << 20)
    vmem_clamp = (100 << 20) if big_vmem else (56 << 20)
    if batch_tile is None:
        batch_tile = 2048 if big_vmem else 512

    # Batch tile: multiple of 16 (bf16 sublane pack); aim for >=2 grid steps when the
    # batch allows it so the "parallel" axis can shard over v7x's two TensorCores.
    b16 = _round_up(B, 16)
    tb = max(16, min(batch_tile, _round_up(pl.cdiv(b16, 2), 16)))

    def vmem_est(tb_):
        act = 2 * (tb_ * in_p * 2 + tb_ * out_p * out_bytes)           # dbl-buffered x / out
        wgt = in_p * 2 * out_p * 2 + out_p * out_p * 2 + 3 * out_p * 4  # single-buffered weights
        tmp = tb_ * out_p * (8 + 2 + 4 + 4)                              # hr f32, h bf16, h f32, r f32
        return act + wgt + tmp

    while tb > 16 and vmem_est(tb) > vmem_clamp:
        tb = max(16, _round_up(tb // 2, 16))

    b_pad = _round_up(B, tb)
    vmem_limit = int(min(max(2 * vmem_est(tb), 32 << 20), vmem_clamp))

    # Input: cast to bf16; pad only when needed (avoids an extra full-HBM pass).
    if B == b_pad and in_f == in_p:
        xp = x.astype(jnp.bfloat16)
    else:
        xp = jnp.zeros((b_pad, in_p), jnp.bfloat16).at[:B, :in_f].set(x.astype(jnp.bfloat16))

    flops = 2 * b_pad * (in_p * 2 * out_p + out_p * out_p)
    bytes_accessed = (b_pad * in_p * 2 + (2 * in_p + out_p) * out_p * 2
                      + 3 * out_p * 4 + b_pad * out_p * out_bytes)
    cost = pl.CostEstimate(flops=flops, transcendentals=0, bytes_accessed=bytes_accessed)

    # Grid-invariant weights / shift vectors: constant block index (stay resident),
    # single-buffered -- double-buffering them would only burn VMEM.
    def weight_spec(a):
        try:
            return pl.BlockSpec(a.shape, lambda i: (0, 0), pipeline_mode=pl.Buffered(1))
        except TypeError:
            return pl.BlockSpec(a.shape, lambda i: (0, 0))

    grid_spec = pltpu.PrefetchScalarGridSpec(
        num_scalar_prefetch=0,
        grid=(b_pad // tb,),
        in_specs=[
            pl.BlockSpec((tb, in_p), lambda i: (i, 0)),       # x, tiled over batch
            weight_spec(fp["w1ws"]), weight_spec(fp["t1bs"]),
            weight_spec(fp["w2"]), weight_spec(fp["t2"]),
        ],
        out_specs=pl.BlockSpec((tb, out_p), lambda i: (i, 0)),  # lane-dense (128-mult)
    )

    out = pl.pallas_call(
        residual_block_kernel,
        out_shape=jax.ShapeDtypeStruct((b_pad, out_p), out_dtype),
        grid_spec=grid_spec,
        compiler_params=pltpu.CompilerParams(
            dimension_semantics=("parallel",),
            vmem_limit_bytes=vmem_limit,
        ),
        cost_estimate=cost,
    )(xp, fp["w1ws"], fp["t1bs"], fp["w2"], fp["t2"])

    if B == b_pad and out_f == out_p:
        return out
    return out[:B, :out_f]


def build_params(key, in_f, out_f):
    """Deterministic synthetic init mimicking PyTorch defaults (uniform +-1/sqrt(fan_in))
    and a fresh BatchNorm1d (gamma=1, beta=0, running_mean=0, running_var=1)."""
    ks = jax.random.split(key, 6)

    def lin(kw, kb, fan_in, fan_out):
        bound = 1.0 / np.sqrt(fan_in)
        w = jax.random.uniform(kw, (fan_in, fan_out), jnp.float32, -bound, bound)
        b = jax.random.uniform(kb, (1, fan_out), jnp.float32, -bound, bound)
        return w, b

    w1, b1 = lin(ks[0], ks[1], in_f, out_f)
    w2, b2 = lin(ks[2], ks[3], out_f, out_f)
    if in_f != out_f:
        ws, bs = lin(ks[4], ks[5], in_f, out_f)
    else:
        ws, bs = None, None

    ones = jnp.ones((1, out_f), jnp.float32)
    zeros = jnp.zeros((1, out_f), jnp.float32)
    return dict(w1=w1, b1=b1, w2=w2, b2=b2, ws=ws, bs=bs,
                gamma1=ones, beta1=zeros, rmean1=zeros, rvar1=ones,
                gamma2=ones, beta2=zeros, rmean2=zeros, rvar2=ones)


def residual_block_ref(x, p, eps=1e-5):
    """Pure-JAX f32 reference on the UNFOLDED params (eval-mode BN, identity dropout)."""
    s1 = p["gamma1"] / jnp.sqrt(p["rvar1"] + eps)
    t1 = p["beta1"] - p["rmean1"] * s1
    s2 = p["gamma2"] / jnp.sqrt(p["rvar2"] + eps)
    t2 = p["beta2"] - p["rmean2"] * s2
    h = x @ p["w1"] + p["b1"]
    h = h * s1 + t1
    h = jnp.maximum(h, 0.0)
    h = h @ p["w2"] + p["b2"]
    h = h * s2 + t2
    r = (x @ p["ws"] + p["bs"]) if p["ws"] is not None else x
    return jnp.maximum(h + r, 0.0)


if __name__ == "__main__":
    B, IN_F, OUT_F = 8, 32, 64
    key = jax.random.PRNGKey(0)
    kx, kp = jax.random.split(key)
    x = jax.random.normal(kx, (B, IN_F), jnp.float32)

    params = build_params(kp, IN_F, OUT_F)
    fparams = fold_params(params)

    out = residual_block(x, fparams)
    out = jax.block_until_ready(out)

    ref = residual_block_ref(x, params)
    # Looser tolerance: weights/activations/output are bf16 (f32 MXU accumulate).
    np.testing.assert_allclose(np.asarray(out, dtype=np.float32), np.asarray(ref),
                               rtol=2e-2, atol=2e-2)
    print("KERNEL_OK")
</pallas_src>

<mosaic_0001>
module attributes {stable_mosaic.version = 11 : i64} {
  func.func @residual_block_kernel(%arg0: i32, %arg1: memref<16x128xbf16, #tpu.memory_space<vmem>>, %arg2: memref<128x256xbf16, #tpu.memory_space<vmem>>, %arg3: memref<1x256xf32, #tpu.memory_space<vmem>>, %arg4: memref<128x128xbf16, #tpu.memory_space<vmem>>, %arg5: memref<1x128xf32, #tpu.memory_space<vmem>>, %arg6: memref<16x128xbf16, #tpu.memory_space<vmem>>) attributes {dimension_semantics = [#tpu.dimension_semantics<parallel>], iteration_bounds = array<i64: 1>, scalar_prefetch = 0 : i64, scratch_operands = 0 : i64, tpu.core_type = #tpu.core_type<tc>, window_params = [{transform_indices = @transform_0, window_bounds = array<i64: 16, 128>}, {pipeline_mode = #tpu.pipeline_mode<synchronous>, transform_indices = @transform_1, window_bounds = array<i64: 128, 256>}, {pipeline_mode = #tpu.pipeline_mode<synchronous>, transform_indices = @transform_2, window_bounds = array<i64: 1, 256>}, {pipeline_mode = #tpu.pipeline_mode<synchronous>, transform_indices = @transform_3, window_bounds = array<i64: 128, 128>}, {pipeline_mode = #tpu.pipeline_mode<synchronous>, transform_indices = @transform_4, window_bounds = array<i64: 1, 128>}, {transform_indices = @transform_5, window_bounds = array<i64: 16, 128>}]} {
    %c0 = arith.constant 0 : index
    %c0_0 = arith.constant 0 : index
    %0 = vector.load %arg1[%c0, %c0_0] : memref<16x128xbf16, #tpu.memory_space<vmem>>, vector<16x128xbf16>
    %c0_1 = arith.constant 0 : index
    %c0_2 = arith.constant 0 : index
    %1 = vector.load %arg2[%c0_1, %c0_2] : memref<128x256xbf16, #tpu.memory_space<vmem>>, vector<128x256xbf16>
    %cst = arith.constant dense<0.000000e+00> : vector<16x256xf32>
    %2 = tpu.matmul %0, %1, %cst {dimension_numbers = #tpu.dot_dimension_numbers<[1], [0], [0], [1], [0, 0, 1, 1], [], []>} : vector<16x128xbf16>, vector<128x256xbf16>, vector<16x256xf32> -> vector<16x256xf32>
    %c0_3 = arith.constant 0 : index
    %c0_4 = arith.constant 0 : index
    %3 = vector.load %arg3[%c0_3, %c0_4] : memref<1x256xf32, #tpu.memory_space<vmem>>, vector<1x256xf32>
    %4 = vector.broadcast %3 : vector<1x256xf32> to vector<16x256xf32>
    %5 = arith.addf %2, %4 : vector<16x256xf32>
    %6 = vector.extract_strided_slice %5 {offsets = [0, 0], sizes = [16, 128], strides = [1, 1]} : vector<16x256xf32> to vector<16x128xf32>
    %cst_5 = arith.constant 0.000000e+00 : f32
    %7 = vector.broadcast %cst_5 : f32 to vector<16x128xf32>
    %8 = arith.maximumf %6, %7 : vector<16x128xf32>
    %9 = vector.extract_strided_slice %5 {offsets = [0, 128], sizes = [16, 128], strides = [1, 1]} : vector<16x256xf32> to vector<16x128xf32>
    %10 = arith.truncf %8 : vector<16x128xf32> to vector<16x128xbf16>
    %c0_6 = arith.constant 0 : index
    %c0_7 = arith.constant 0 : index
    %11 = vector.load %arg4[%c0_6, %c0_7] : memref<128x128xbf16, #tpu.memory_space<vmem>>, vector<128x128xbf16>
    %cst_8 = arith.constant dense<0.000000e+00> : vector<16x128xf32>
    %12 = tpu.matmul %10, %11, %cst_8 {dimension_numbers = #tpu.dot_dimension_numbers<[1], [0], [0], [1], [0, 0, 1, 1], [], []>} : vector<16x128xbf16>, vector<128x128xbf16>, vector<16x128xf32> -> vector<16x128xf32>
    %c0_9 = arith.constant 0 : index
    %c0_10 = arith.constant 0 : index
    %13 = vector.load %arg5[%c0_9, %c0_10] : memref<1x128xf32, #tpu.memory_space<vmem>>, vector<1x128xf32>
    %14 = vector.broadcast %13 : vector<1x128xf32> to vector<16x128xf32>
    %15 = arith.addf %12, %14 : vector<16x128xf32>
    %16 = arith.addf %15, %9 : vector<16x128xf32>
    %cst_11 = arith.constant 0.000000e+00 : f32
    %17 = vector.broadcast %cst_11 : f32 to vector<16x128xf32>
    %18 = arith.maximumf %16, %17 : vector<16x128xf32>
    %19 = arith.truncf %18 : vector<16x128xf32> to vector<16x128xbf16>
    %c0_12 = arith.constant 0 : index
    %c0_13 = arith.constant 0 : index
    %20 = vector.load %arg6[%c0_12, %c0_13] : memref<16x128xbf16, #tpu.memory_space<vmem>>, vector<16x128xbf16>
    tpu.vector_store %arg6[%c0_12, %c0_13], %19 {strides = array<i32>} : memref<16x128xbf16, #tpu.memory_space<vmem>>, vector<16x128xbf16>,
    return
  }
  func.func @transform_0(%arg0: i32) -> (i32, i32) {
    %c0_i32 = arith.constant 0 : i32
    %c0_i32_0 = arith.constant 0 : i32
    return %arg0, %c0_i32 : i32, i32
  }
  func.func @transform_1(%arg0: i32) -> (i32, i32) {
    %c0_i32 = arith.constant 0 : i32
    %c0_i32_0 = arith.constant 0 : i32
    %c0_i32_1 = arith.constant 0 : i32
    return %c0_i32, %c0_i32_0 : i32, i32
  }
  func.func @transform_2(%arg0: i32) -> (i32, i32) {
    %c0_i32 = arith.constant 0 : i32
    %c0_i32_0 = arith.constant 0 : i32
    %c0_i32_1 = arith.constant 0 : i32
    return %c0_i32, %c0_i32_0 : i32, i32
  }
  func.func @transform_3(%arg0: i32) -> (i32, i32) {
    %c0_i32 = arith.constant 0 : i32
    %c0_i32_0 = arith.constant 0 : i32
    %c0_i32_1 = arith.constant 0 : i32
    return %c0_i32, %c0_i32_0 : i32, i32
  }
  func.func @transform_4(%arg0: i32) -> (i32, i32) {
    %c0_i32 = arith.constant 0 : i32
    %c0_i32_0 = arith.constant 0 : i32
    %c0_i32_1 = arith.constant 0 : i32
    return %c0_i32, %c0_i32_0 : i32, i32
  }
  func.func @transform_5(%arg0: i32) -> (i32, i32) {
    %c0_i32 = arith.constant 0 : i32
    %c0_i32_0 = arith.constant 0 : i32
    return %arg0, %c0_i32 : i32, i32
  }
}

</mosaic_0001>

<bundles_post_ra>
// kernel: tpu_custom_call.1
= control target key start
LH: loop header
LB: loop body
LE: loop exit
PB: predicated region body
PF: predicated region fallthrough
CT: control target
= control target key end

     0   :  { %10 = vsyncpa [#allocation3], 0  ;;  %s668_s0 = inlined_call_operand.hbm [shape: bf16[16,128], index: 0, kind: input, shape index: {}]   ;;  %s669_s1 = inlined_call_operand.hbm [shape: bf16[128,256], index: 1, kind: input, shape index: {}]   ;;  %s670_s2 = inlined_call_operand.hbm [shape: f32[1,256], index: 2, kind: input, shape index: {}]   ;;  %s671_s3 = inlined_call_operand.hbm [shape: bf16[128,128], index: 3, kind: input, shape index: {}]   ;;  %s672_s4 = inlined_call_operand.vmem [shape: f32[1,128], index: 4, kind: input, shape index: {}]   ;;  %s673_s5 = inlined_call_operand.hbm [shape: bf16[16,128], index: 5, kind: output, shape index: {}]  }
   0x1   :  { %11 = vsyncpa [#allocation6], 0 }
   0x2   :  { %12 = vsyncpa [#allocation9], 0  ;;  %s31_s20 = sshll.u32 %s669_s1, 4  ;;  %s32_s20 = int_to_ptr.hbm [resolvable:$true] %s31_s20 }
   0x3   :  { %13 = vsyncpa [#allocation4], 0  ;;  %s602_s21 = smov [#allocation5]   ;;  %s18_s25 = sshll.u32 %s668_s0, 4  ;;  %s19_s25 = int_to_ptr.hbm [resolvable:$true] %s18_s25 }
   0x4   :  { %s33_s22 = sshll.u32 %s602_s21, 4  ;;  %s603_s26 = smov 128   ;;  %s34_s22 = int_to_ptr.vmem [resolvable:$true] %s33_s22 }
   0x5   :  { %s604_s27 = smov 8   ;;  %s605_s28 = smov [#allocation2]  }
   0x6   :  { %39 = dma.hbm_to_vmem [thread:$0]  %s32_s20, 2048, %s34_s22, [#allocation6], %s603_s26, %s603_s26, %s604_s27  }
   0x7   :  { %s20_s29 = sshll.u32 %s605_s28, 4  ;;  %s606_s30 = smov 64   ;;  %s21_s29 = int_to_ptr.vmem [resolvable:$true] %s20_s29 }
   0x8   :  { %s607_s6 = smov 4   ;;  %s45_s8 = sshll.u32 %s670_s2, 4  ;;  %s46_s8 = int_to_ptr.hbm [resolvable:$true] %s45_s8 }
   0x9   :  { %26 = dma.hbm_to_vmem [thread:$0]  %s19_s25, 128, %s21_s29, [#allocation3], %s606_s30, %s606_s30, %s607_s6  }
   0xa   :  { %s608_s9 = smov [#allocation7]   ;;  %s55_s12 = sshll.u32 %s671_s3, 4  ;;  %s56_s12 = int_to_ptr.hbm [resolvable:$true] %s55_s12 }
   0xb   :  { %s47_s0 = sshll.u32 %s608_s9, 4  ;;  %s609_s13 = smov [#allocation8]   ;;  %s48_s0 = int_to_ptr.vmem [resolvable:$true] %s47_s0 }
   0xc   :  { %50 = dma.hbm_to_vmem [thread:$0]  %s46_s8, 32, %s48_s0, [#allocation6]  }
   0xd   :  { %s57_s14 = sshll.u32 %s609_s13, 4  ;;  %s58_s14 = int_to_ptr.vmem [resolvable:$true] %s57_s14 }
   0xe   :  { %63 = dma.hbm_to_vmem [thread:$0]  %s56_s12, 1024, %s58_s14, [#allocation9], %s606_s30, %s606_s30, %s607_s6  }
   0xf   :  { %594 = dma.done.wait [#allocation3], 128  }
  0x10   :  { %595 = vsyncadd [#allocation3], 4294967168 }
  0x11   :  { %596 = dma.done.wait [#allocation6], 2080  }
  0x12   :  { %597 = vsyncadd [#allocation6], 4294965216 }
  0x13   :  { %598 = dma.done.wait [#allocation9], 1024  }
  0x14   :  { %599 = vsyncadd [#allocation9], 4294966272  ;;  %v396_v0 = vld [vmem:[#allocation5 + $0x70] sm:$0xf]  ;;  %v450_v1 = vld [vmem:[#allocation5 + $0x74] sm:$0xf0] }
  0x15   :  { %v388_v2 = vld [vmem:[#allocation5 + $0x60] sm:$0xf]  ;;  %v397_v3 = vor.u32 %v450_v1, %v396_v0  ;;  %v448_v4 = vld [vmem:[#allocation5 + $0x64] sm:$0xf0]  ;;  %v380_v6 = vld [vmem:[#allocation5 + $0x50] sm:$0xf] }
  0x16   :  { %v389_v5 = vor.u32 %v448_v4, %v388_v2  ;;  %v446_v7 = vld [vmem:[#allocation5 + $0x54] sm:$0xf0]  ;;  %v449_v8 = vld [vmem:[#allocation5 + $0x74] sm:$0xf]  ;;  %v398_v9 = vld [vmem:[#allocation5 + $0x78] sm:$0xf0] }
  0x17   :  { %192 = vmatpush.bf16.msra.mxu0 %v397_v3  ;;  %v458_v10 = vld [vmem:[#allocation8 + $0x38] sm:$0xff]  ;;  %v447_v11 = vld [vmem:[#allocation5 + $0x64] sm:$0xf]  ;;  %v381_v12 = vor.u32 %v446_v7, %v380_v6  ;;  %v401_v13 = vor.u32 %v449_v8, %v398_v9  ;;  %v390_v14 = vld [vmem:[#allocation5 + $0x68] sm:$0xf0]  ;;  %s610_s15 = smov [#allocation10]  }
  0x18   :  { %v372_v15 = vld [vmem:[#allocation5 + $0x40] sm:$0xf]  ;;  %v444_v16 = vld [vmem:[#allocation5 + $0x44] sm:$0xf0]  ;;  %291 = vmatpush.bf16.msra.mxu2 %v458_v10  ;;  %v457_v17 = vld [vmem:[#allocation8 + $0x30] sm:$0xff]  ;;  %v393_v18 = vor.u32 %v447_v11, %v390_v14  ;;  %s317_s16 = sshll.u32 %s610_s15, 4  ;;  %s318_s16 = int_to_ptr.vmem [resolvable:$true] %s317_s16 }
  0x19   :  { %206 = vmatpush.bf16.msra.mxu1 %v401_v13  ;;  %v445_v19 = vld [vmem:[#allocation5 + $0x54] sm:$0xf]  ;;  %v382_v20 = vld [vmem:[#allocation5 + $0x58] sm:$0xf0]  ;;  %v373_v21 = vor.u32 %v444_v16, %v372_v15  ;;  %v364_v22 = vld [vmem:[#allocation5 + $0x30] sm:$0xf] }
  0x1a   :  { %v442_v23 = vld [vmem:[#allocation5 + $0x34] sm:$0xf0]  ;;  %v456_v24 = vld [vmem:[#allocation8 + $0x28] sm:$0xff]  ;;  %v385_v25 = vor.u32 %v445_v19, %v382_v20  ;;  %v443_v26 = vld [vmem:[#allocation5 + $0x44] sm:$0xf]  ;;  %s319_s19 = sshll.u32 %s673_s5, 4  ;;  %s320_s19 = int_to_ptr.hbm [resolvable:$true] %s319_s19 }
  0x1b   :  { %193 = vmatpush.bf16.msra.mxu0 %v389_v5  ;;  %v374_v27 = vld [vmem:[#allocation5 + $0x48] sm:$0xf0]  ;;  %v365_v28 = vor.u32 %v442_v23, %v364_v22  ;;  %v356_v29 = vld [vmem:[#allocation5 + $0x20] sm:$0xf]  ;;  %v440_v30 = vld [vmem:[#allocation5 + $0x24] sm:$0xf0] }
  0x1c   :  { %292 = vmatpush.bf16.msra.mxu2 %v457_v17  ;;  %v455_v31 = vld [vmem:[#allocation8 + $0x20] sm:$0xff]  ;;  %v377_v32 = vor.u32 %v443_v26, %v374_v27  ;;  %v441_v33 = vld [vmem:[#allocation5 + $0x34] sm:$0xf]  ;;  %v366_v34 = vld [vmem:[#allocation5 + $0x38] sm:$0xf0]  ;;  %v357_v35 = vor.u32 %v440_v30, %v356_v29 }
  0x1d   :  { %207 = vmatpush.bf16.msra.mxu1 %v393_v18  ;;  %v348_v36 = vld [vmem:[#allocation5 + $0x10] sm:$0xf]  ;;  %v438_v37 = vld [vmem:[#allocation5 + $0x14] sm:$0xf0]  ;;  %v369_v38 = vor.u32 %v441_v33, %v366_v34  ;;  %v340_v40 = vld [vmem:[#allocation5] sm:$0xf] }
  0x1e   :  { %v349_v39 = vor.u32 %v438_v37, %v348_v36  ;;  %v436_v41 = vld [vmem:[#allocation5 + $0x4] sm:$0xf0]  ;;  %v434_v43 = vld [vmem:[#allocation2] sm:$0xff]  ;;  %v439_v45 = vld [vmem:[#allocation5 + $0x24] sm:$0xf] }
  0x1f   :  { %194 = vmatpush.bf16.msra.mxu0 %v381_v12  ;;  %v341_v42 = vor.u32 %v436_v41, %v340_v40  ;;  %v454_v44 = vld [vmem:[#allocation8 + $0x18] sm:$0xff]  ;;  %v358_v46 = vld [vmem:[#allocation5 + $0x28] sm:$0xf0]  ;;  %v453_v48 = vld [vmem:[#allocation8 + $0x10] sm:$0xff] }
  0x20   :  { %293 = vmatpush.bf16.msra.mxu2 %v456_v24  ;;  %v361_v47 = vor.u32 %v439_v45, %v358_v46  ;;  %v437_v49 = vld [vmem:[#allocation5 + $0x14] sm:$0xf]  ;;  %v350_v50 = vld [vmem:[#allocation5 + $0x18] sm:$0xf0]  ;;  %v452_v52 = vld [vmem:[#allocation8 + $0x8] sm:$0xff] }
  0x21   :  { %208 = vmatpush.bf16.msra.mxu1 %v385_v25  ;;  %v353_v51 = vor.u32 %v437_v49, %v350_v50  ;;  %v435_v53 = vld [vmem:[#allocation5 + $0x4] sm:$0xf]  ;;  %v342_v54 = vld [vmem:[#allocation5 + $0x8] sm:$0xf0]  ;;  %v100_v57 = vld [vmem:[#allocation7] sm:$0x3] }
  0x22   :  { %v345_v55 = vor.u32 %v435_v53, %v342_v54  ;;  %v451_v56 = vld [vmem:[#allocation8] sm:$0xff]  ;;  %v102_v59 = vperm.slane %v100_v57, 0  ;;  %v103_v4 = vperm.slane %v100_v57, 1  ;;  %v473_v5 = vld [vmem:[%s672_s4] ss:$0 sm:$0xff] }
  0x23   :  { %195 = vmatpush.bf16.msra.mxu0 %v373_v21 }
  0x24   :  { %294 = vmatpush.bf16.msra.mxu2 %v455_v31 }
  0x25   :  { %209 = vmatpush.bf16.msra.mxu1 %v377_v32 }
  0x27   :  { %196 = vmatpush.bf16.msra.mxu0 %v365_v28 }
  0x28   :  { %295 = vmatpush.bf16.msra.mxu2 %v454_v44 }
  0x29   :  { %210 = vmatpush.bf16.msra.mxu1 %v369_v38 }
  0x2b   :  { %197 = vmatpush.bf16.msra.mxu0 %v357_v35 }
  0x2c   :  { %296 = vmatpush.bf16.msra.mxu2 %v453_v48 }
  0x2d   :  { %211 = vmatpush.bf16.msra.mxu1 %v361_v47 }
  0x2f   :  { %198 = vmatpush.bf16.msra.mxu0 %v349_v39 }
  0x30   :  { %297 = vmatpush.bf16.msra.mxu2 %v452_v52 }
  0x31   :  { %212 = vmatpush.bf16.msra.mxu1 %v353_v51 }
  0x33   :  { %199 = vmatpush.bf16.msra.mxu0 %v341_v42 }
  0x34   :  { %298 = vmatpush.bf16.msra.mxu2 %v451_v56 }
  0x35   :  { %213 = vmatpush.bf16.msra.mxu1 %v345_v55 }
  0x36   :  { %200 = vmatmul.bf16.vlgmr.msra.gmra.mxu0 %v434_v43 }
  0x38   :  { %214 = vmatmul.bf16.vlgmr.msra.gmra.mxu1 %v434_v43 }
  0xb3   :  { %v201_v58 = vpop.f32.mrf.mxu0 }
  0xb4   :  { %v202_v60 = vadd.f32 %v201_v58, %v102_v59 }
  0xb5   :  { %v215_v2 = vpop.f32.mrf.mxu1 }
  0xb6   :  { %v220_v63 = vmax.f32 %v202_v60, 0.0  ;;  %v216_v6 = vadd.f32 %v215_v2, %v103_v4 }
  0xbb   :  { %v203_v61 = vpop.f32.mrf.mxu0 }
  0xbc   :  { %v204_v62 = vadd.f32 %v203_v61, %v102_v59 }
  0xbd   :  { %v217_v8 = vpop.f32.mrf.mxu1 }
  0xbe   :  { %v221_v0 = vmax.f32 %v204_v62, 0.0  ;;  %v218_v10 = vadd.f32 %v217_v8, %v103_v4 }
  0xc0   :  { %v222_v1 = vpack.c.bf16 %v221_v0, %v220_v63 }
  0xc2   :  { %299 = vmatmul.bf16.vlgmr.msra.gmra.mxu2 %v222_v1 }
 0x145   :  { %v300_v3 = vpop.f32.mrf.mxu2 }
 0x146   :  { %v301_v7 = vadd.f32 %v473_v5, %v300_v3 }
 0x148   :  { %v305_v11 = vadd.f32 %v301_v7, %v216_v6 }
 0x14a   :  { %v307_v14 = vmax.f32 %v305_v11, 0.0 }
 0x14d   :  { %v302_v9 = vpop.f32.mrf.mxu2 }
 0x14e   :  { %v303_v12 = vadd.f32 %v473_v5, %v302_v9 }
 0x150   :  { %v306_v13 = vadd.f32 %v303_v12, %v218_v10 }
 0x152   :  { %v308_v15 = vmax.f32 %v306_v13, 0.0 }
 0x154   :  { %v462_v16 = vpack.c.bf16 %v308_v15, %v307_v14 }
 0x156   :  { %463 = vst [vmem:[#allocation10] sm:$0xff] %v462_v16  }
 0x157   :  { %325 = dma.vmem_to_hbm [thread:$0]  %s318_s16, 128, %s320_s19, [#allocation4], %s606_s30, %s606_s30, %s607_s6  }
 0x158   :  { %600 = dma.done.wait [#allocation4], 128  }
 0x159   :  { %601 = vsyncadd [#allocation4], 4294967168 }
 0x15a   :  { %330 = vsyncpa [#allocation3], 1 }
 0x15b   :  { %331 = vsyncpa [#allocation6], 1 }
 0x15c   :  { %332 = vsyncpa [#allocation9], 1 }
 0x15d   :  { %333 = vsyncpa [#allocation4], 1 }

</bundles_post_ra>
